<compile_context>
chip_gen: v6e
topology: v6e:2x2x1
jax: 0.10.0
libtpu: 0.0.40
codegen_flags: <defaults>
</compile_context>

<pallas_src>
import functools

import jax
import jax.numpy as jnp
from jax.experimental import pallas as pl
from jax.experimental.pallas import tpu as pltpu


def _round_up(x, m):
    return (x + m - 1) // m * m


def base_model_kernel(q1_ref, q2_ref, feat_ref,
                      wsh_ref, bsh_ref,            # shared_fc:            [F, H] bf16, [1, H] f32
                      wg1_ref, wg2_ref,            # W_ih (i,g,o cols):    2 x [H, 3H] bf16
                      wgf_ref,                     # folded feat->gates:   [FD, 3H] bf16
                      bg_ref,                      # folded gate bias:     [1, 3H] f32
                      wout_ref, bout_ref,          # fc_out:               [1, H] f32, [1, 1] f32
                      out_ref):                    # [tb, 1] f32
    H = wsh_ref.shape[1]

    # shared_fc (Linear + ReLU) on q1 and q2: bf16 MXU, f32 accumulate.
    q1h = jnp.maximum(
        jnp.dot(q1_ref[...], wsh_ref[...], preferred_element_type=jnp.float32)
        + bsh_ref[...], 0.0)                                           # [tb, H] f32
    q2h = jnp.maximum(
        jnp.dot(q2_ref[...], wsh_ref[...], preferred_element_type=jnp.float32)
        + bsh_ref[...], 0.0)                                           # [tb, H] f32

    # gates (i, g, o only) = q1h @ Wg1 + q2h @ Wg2 + feat @ (Wf Wg_f) + bias
    gates = (jnp.dot(q1h.astype(jnp.bfloat16), wg1_ref[...],
                     preferred_element_type=jnp.float32)
             + jnp.dot(q2h.astype(jnp.bfloat16), wg2_ref[...],
                       preferred_element_type=jnp.float32)
             + jnp.dot(feat_ref[...], wgf_ref[...],
                       preferred_element_type=jnp.float32)
             + bg_ref[...])                                            # [tb, 3H] f32

    # Single-step LSTM cell with h0 = c0 = 0 (forget-gate term is exactly zero).
    i_g = jax.nn.sigmoid(gates[:, 0 * H:1 * H])
    g_g = jnp.tanh(gates[:, 1 * H:2 * H])
    o_g = jax.nn.sigmoid(gates[:, 2 * H:3 * H])
    h = o_g * jnp.tanh(i_g * g_g)                                      # [tb, H] f32

    # fc_out: Linear(H, 1) as VPU multiply + lane reduction (avoid N=1 MXU op).
    out_ref[...] = (jnp.sum(h * wout_ref[...], axis=-1, keepdims=True)
                    + bout_ref[...])


def init_params(key, feature_dim, features_dim, hidden_dim):
    """Deterministic synthetic f32 parameters mirroring the torch module
    (linear weights stored pre-transposed as [in, out])."""
    ks = jax.random.split(key, 10)
    s = 0.05
    return {
        "w_shared": jax.random.normal(ks[0], (feature_dim, hidden_dim), jnp.float32) * s,
        "b_shared": jax.random.normal(ks[1], (1, hidden_dim), jnp.float32) * s,
        "w_feat":   jax.random.normal(ks[2], (features_dim, hidden_dim), jnp.float32) * s,
        "b_feat":   jax.random.normal(ks[3], (1, hidden_dim), jnp.float32) * s,
        # LSTM weight_ih_l0 is [4H, 3H] in torch; stored here as [3H, 4H].
        "w_ih":     jax.random.normal(ks[4], (3 * hidden_dim, 4 * hidden_dim), jnp.float32) * s,
        "b_ih":     jax.random.normal(ks[5], (1, 4 * hidden_dim), jnp.float32) * s,
        "b_hh":     jax.random.normal(ks[6], (1, 4 * hidden_dim), jnp.float32) * s,
        # weight_hh_l0 is mathematically irrelevant here (h0 == 0, seq_len == 1).
        "w_out":    jax.random.normal(ks[7], (hidden_dim, 1), jnp.float32) * s,
        "b_out":    jax.random.normal(ks[8], (1, 1), jnp.float32) * s,
    }


def prepare_params(p, hidden_dim):
    """One-time prep (all folds in f32, exact):
      * drop the forget-gate columns of W_ih / biases (c0 == 0),
      * split W_ih per input block (q1h / q2h / features),
      * fold features_fc (Linear, no activation) into its gate matmul,
      * cast matmul weights to bf16."""
    H = hidden_dim

    def keep_igo(m):  # drop the 'f' gate columns (torch gate order i, f, g, o)
        return jnp.concatenate([m[:, 0:H], m[:, 2 * H:4 * H]], axis=1)

    w_igo = keep_igo(p["w_ih"])                       # [3H, 3H]
    b_igo = keep_igo(p["b_ih"] + p["b_hh"])           # [1, 3H]

    wg1 = w_igo[0 * H:1 * H]                          # q1h block   [H, 3H]
    wg2 = w_igo[1 * H:2 * H]                          # q2h block   [H, 3H]
    wgf = w_igo[2 * H:3 * H]                          # feat_h block [H, 3H]

    # Fold features_fc: (feat @ Wf + bf) @ wgf == feat @ (Wf wgf) + bf @ wgf
    w_g_feat = p["w_feat"] @ wgf                      # [FD, 3H]
    b_gates = b_igo + p["b_feat"] @ wgf               # [1, 3H]

    return {
        "w_shared": p["w_shared"].astype(jnp.bfloat16),
        "b_shared": p["b_shared"],
        "w_g_q1":   wg1.astype(jnp.bfloat16),
        "w_g_q2":   wg2.astype(jnp.bfloat16),
        "w_g_feat": w_g_feat.astype(jnp.bfloat16),
        "b_gates":  b_gates,
        "w_out":    p["w_out"].reshape(1, H),         # row vector for the VPU reduce
        "b_out":    p["b_out"],
    }


@functools.partial(jax.jit, static_argnames=("block_b",))
def base_model_forward(q1, q2, features, params, block_b=512):
    B, F = q1.shape
    FD = features.shape[1]
    H = params["w_shared"].shape[1]
    G = params["b_gates"].shape[1]                    # 3H (i, g, o gates)

    # Batch tile: <= block_b rows, multiple of 8 sublanes; pad batch if needed.
    tb = min(block_b, _round_up(B, 8))
    Bp = _round_up(B, tb)
    if Bp != B:
        pad = ((0, Bp - B), (0, 0))
        q1 = jnp.pad(q1, pad)
        q2 = jnp.pad(q2, pad)
        features = jnp.pad(features, pad)

    # bf16 matmul operands; accumulation stays f32 inside the kernel.
    q1 = q1.astype(jnp.bfloat16)
    q2 = q2.astype(jnp.bfloat16)
    features = features.astype(jnp.bfloat16)

    row = lambda i: (i, 0)         # batch-tiled operands
    const = lambda i: (0, 0)       # weights stay VMEM-resident across grid steps

    out = pl.pallas_call(
        base_model_kernel,
        out_shape=jax.ShapeDtypeStruct((Bp, 1), jnp.float32),
        grid=(Bp // tb,),
        in_specs=[
            pl.BlockSpec((tb, F), row),          # q1
            pl.BlockSpec((tb, F), row),          # q2
            pl.BlockSpec((tb, FD), row),         # features
            pl.BlockSpec((F, H), const),         # w_shared
            pl.BlockSpec((1, H), const),         # b_shared
            pl.BlockSpec((H, G), const),         # w_ih block for q1h
            pl.BlockSpec((H, G), const),         # w_ih block for q2h
            pl.BlockSpec((FD, G), const),        # folded features -> gates
            pl.BlockSpec((1, G), const),         # folded gate bias
            pl.BlockSpec((1, H), const),         # w_out (row)
            pl.BlockSpec((1, 1), const),         # b_out
        ],
        out_specs=pl.BlockSpec((tb, 1), row),
        compiler_params=pltpu.CompilerParams(
            dimension_semantics=("parallel",)),  # megacore sharding of the batch axis
    )(q1, q2, features,
      params["w_shared"], params["b_shared"],
      params["w_g_q1"], params["w_g_q2"], params["w_g_feat"], params["b_gates"],
      params["w_out"], params["b_out"])
    return out[:B]


def reference_forward(q1, q2, features, params):
    """Pure-JAX f32 reference mirroring the PyTorch forward (lstm head)."""
    H = params["w_shared"].shape[1]
    q1h = jnp.maximum(q1 @ params["w_shared"] + params["b_shared"], 0.0)
    q2h = jnp.maximum(q2 @ params["w_shared"] + params["b_shared"], 0.0)
    fh = features @ params["w_feat"] + params["b_feat"]
    combined = jnp.concatenate([q1h, q2h, fh], axis=1)
    gates = combined @ params["w_ih"] + params["b_ih"] + params["b_hh"]
    i = jax.nn.sigmoid(gates[:, 0 * H:1 * H])
    g = jnp.tanh(gates[:, 2 * H:3 * H])
    o = jax.nn.sigmoid(gates[:, 3 * H:4 * H])
    h = o * jnp.tanh(i * g)        # forget-gate term is exactly zero (c0 == 0)
    return h @ params["w_out"] + params["b_out"]


if __name__ == "__main__":
    B, FEATURE_DIM, FEATURES_DIM, HIDDEN_DIM = 8, 768, 40, 128

    key = jax.random.PRNGKey(0)
    kq1, kq2, kfe, kp = jax.random.split(key, 4)
    q1 = jax.random.normal(kq1, (B, FEATURE_DIM), jnp.float32)
    q2 = jax.random.normal(kq2, (B, FEATURE_DIM), jnp.float32)
    features = jax.random.normal(kfe, (B, FEATURES_DIM), jnp.float32)

    params_f32 = init_params(kp, FEATURE_DIM, FEATURES_DIM, HIDDEN_DIM)
    params = prepare_params(params_f32, HIDDEN_DIM)

    out = base_model_forward(q1, q2, features, params)
    jax.block_until_ready(out)

    ref = reference_forward(q1, q2, features, params_f32)
    assert out.shape == (B, 1), out.shape
    # bf16 matmul operands vs f32 reference -> relaxed tolerance.
    assert jnp.allclose(out, ref, atol=2e-2, rtol=2e-2), "mismatch vs. JAX reference"

    print("KERNEL_OK")
</pallas_src>

<mosaic_0001>
module attributes {stable_mosaic.version = 11 : i64} {
  func.func @base_model_kernel(%arg0: i32, %arg1: memref<8x768xbf16, #tpu.memory_space<vmem>>, %arg2: memref<8x768xbf16, #tpu.memory_space<vmem>>, %arg3: memref<8x40xbf16, #tpu.memory_space<vmem>>, %arg4: memref<768x128xbf16, #tpu.memory_space<vmem>>, %arg5: memref<1x128xf32, #tpu.memory_space<vmem>>, %arg6: memref<128x384xbf16, #tpu.memory_space<vmem>>, %arg7: memref<128x384xbf16, #tpu.memory_space<vmem>>, %arg8: memref<40x384xbf16, #tpu.memory_space<vmem>>, %arg9: memref<1x384xf32, #tpu.memory_space<vmem>>, %arg10: memref<1x128xf32, #tpu.memory_space<vmem>>, %arg11: memref<1x1xf32, #tpu.memory_space<vmem>>, %arg12: memref<8x1xf32, #tpu.memory_space<vmem>>) attributes {dimension_semantics = [#tpu.dimension_semantics<parallel>], iteration_bounds = array<i64: 1>, scalar_prefetch = 0 : i64, scratch_operands = 0 : i64, tpu.core_type = #tpu.core_type<tc>, window_params = [{transform_indices = @transform_0, window_bounds = array<i64: 8, 768>}, {transform_indices = @transform_1, window_bounds = array<i64: 8, 768>}, {transform_indices = @transform_2, window_bounds = array<i64: 8, 40>}, {pipeline_mode = #tpu.pipeline_mode<synchronous>, transform_indices = @transform_3, window_bounds = array<i64: 768, 128>}, {pipeline_mode = #tpu.pipeline_mode<synchronous>, transform_indices = @transform_4, window_bounds = array<i64: 1, 128>}, {pipeline_mode = #tpu.pipeline_mode<synchronous>, transform_indices = @transform_5, window_bounds = array<i64: 128, 384>}, {pipeline_mode = #tpu.pipeline_mode<synchronous>, transform_indices = @transform_6, window_bounds = array<i64: 128, 384>}, {pipeline_mode = #tpu.pipeline_mode<synchronous>, transform_indices = @transform_7, window_bounds = array<i64: 40, 384>}, {pipeline_mode = #tpu.pipeline_mode<synchronous>, transform_indices = @transform_8, window_bounds = array<i64: 1, 384>}, {pipeline_mode = #tpu.pipeline_mode<synchronous>, transform_indices = @transform_9, window_bounds = array<i64: 1, 128>}, {pipeline_mode = #tpu.pipeline_mode<synchronous>, transform_indices = @transform_10, window_bounds = array<i64: 1, 1>}, {transform_indices = @transform_11, window_bounds = array<i64: 8, 1>}]} {
    %c0 = arith.constant 0 : index
    %c0_0 = arith.constant 0 : index
    %0 = vector.load %arg1[%c0, %c0_0] : memref<8x768xbf16, #tpu.memory_space<vmem>>, vector<8x768xbf16>
    %c0_1 = arith.constant 0 : index
    %c0_2 = arith.constant 0 : index
    %1 = vector.load %arg4[%c0_1, %c0_2] : memref<768x128xbf16, #tpu.memory_space<vmem>>, vector<768x128xbf16>
    %cst = arith.constant dense<0.000000e+00> : vector<8x128xf32>
    %2 = tpu.matmul %0, %1, %cst {dimension_numbers = #tpu.dot_dimension_numbers<[1], [0], [0], [1], [0, 0, 1, 1], [], []>} : vector<8x768xbf16>, vector<768x128xbf16>, vector<8x128xf32> -> vector<8x128xf32>
    %c0_3 = arith.constant 0 : index
    %c0_4 = arith.constant 0 : index
    %3 = vector.load %arg5[%c0_3, %c0_4] : memref<1x128xf32, #tpu.memory_space<vmem>>, vector<1x128xf32>
    %4 = vector.broadcast %3 : vector<1x128xf32> to vector<8x128xf32>
    %5 = arith.addf %2, %4 : vector<8x128xf32>
    %cst_5 = arith.constant 0.000000e+00 : f32
    %6 = vector.broadcast %cst_5 : f32 to vector<8x128xf32>
    %7 = arith.maximumf %5, %6 : vector<8x128xf32>
    %c0_6 = arith.constant 0 : index
    %c0_7 = arith.constant 0 : index
    %8 = vector.load %arg2[%c0_6, %c0_7] : memref<8x768xbf16, #tpu.memory_space<vmem>>, vector<8x768xbf16>
    %c0_8 = arith.constant 0 : index
    %c0_9 = arith.constant 0 : index
    %9 = vector.load %arg4[%c0_8, %c0_9] : memref<768x128xbf16, #tpu.memory_space<vmem>>, vector<768x128xbf16>
    %cst_10 = arith.constant dense<0.000000e+00> : vector<8x128xf32>
    %10 = tpu.matmul %8, %9, %cst_10 {dimension_numbers = #tpu.dot_dimension_numbers<[1], [0], [0], [1], [0, 0, 1, 1], [], []>} : vector<8x768xbf16>, vector<768x128xbf16>, vector<8x128xf32> -> vector<8x128xf32>
    %c0_11 = arith.constant 0 : index
    %c0_12 = arith.constant 0 : index
    %11 = vector.load %arg5[%c0_11, %c0_12] : memref<1x128xf32, #tpu.memory_space<vmem>>, vector<1x128xf32>
    %12 = vector.broadcast %11 : vector<1x128xf32> to vector<8x128xf32>
    %13 = arith.addf %10, %12 : vector<8x128xf32>
    %cst_13 = arith.constant 0.000000e+00 : f32
    %14 = vector.broadcast %cst_13 : f32 to vector<8x128xf32>
    %15 = arith.maximumf %13, %14 : vector<8x128xf32>
    %16 = arith.truncf %7 : vector<8x128xf32> to vector<8x128xbf16>
    %c0_14 = arith.constant 0 : index
    %c0_15 = arith.constant 0 : index
    %17 = vector.load %arg6[%c0_14, %c0_15] : memref<128x384xbf16, #tpu.memory_space<vmem>>, vector<128x384xbf16>
    %cst_16 = arith.constant dense<0.000000e+00> : vector<8x384xf32>
    %18 = tpu.matmul %16, %17, %cst_16 {dimension_numbers = #tpu.dot_dimension_numbers<[1], [0], [0], [1], [0, 0, 1, 1], [], []>} : vector<8x128xbf16>, vector<128x384xbf16>, vector<8x384xf32> -> vector<8x384xf32>
    %19 = arith.truncf %15 : vector<8x128xf32> to vector<8x128xbf16>
    %c0_17 = arith.constant 0 : index
    %c0_18 = arith.constant 0 : index
    %20 = vector.load %arg7[%c0_17, %c0_18] : memref<128x384xbf16, #tpu.memory_space<vmem>>, vector<128x384xbf16>
    %cst_19 = arith.constant dense<0.000000e+00> : vector<8x384xf32>
    %21 = tpu.matmul %19, %20, %cst_19 {dimension_numbers = #tpu.dot_dimension_numbers<[1], [0], [0], [1], [0, 0, 1, 1], [], []>} : vector<8x128xbf16>, vector<128x384xbf16>, vector<8x384xf32> -> vector<8x384xf32>
    %22 = arith.addf %18, %21 : vector<8x384xf32>
    %c0_20 = arith.constant 0 : index
    %c0_21 = arith.constant 0 : index
    %23 = vector.load %arg3[%c0_20, %c0_21] : memref<8x40xbf16, #tpu.memory_space<vmem>>, vector<8x40xbf16>
    %c0_22 = arith.constant 0 : index
    %c0_23 = arith.constant 0 : index
    %24 = vector.load %arg8[%c0_22, %c0_23] : memref<40x384xbf16, #tpu.memory_space<vmem>>, vector<40x384xbf16>
    %cst_24 = arith.constant dense<0.000000e+00> : vector<8x384xf32>
    %25 = tpu.matmul %23, %24, %cst_24 {dimension_numbers = #tpu.dot_dimension_numbers<[1], [0], [0], [1], [0, 0, 1, 1], [], []>} : vector<8x40xbf16>, vector<40x384xbf16>, vector<8x384xf32> -> vector<8x384xf32>
    %26 = arith.addf %22, %25 : vector<8x384xf32>
    %c0_25 = arith.constant 0 : index
    %c0_26 = arith.constant 0 : index
    %27 = vector.load %arg9[%c0_25, %c0_26] : memref<1x384xf32, #tpu.memory_space<vmem>>, vector<1x384xf32>
    %28 = vector.broadcast %27 : vector<1x384xf32> to vector<8x384xf32>
    %29 = arith.addf %26, %28 : vector<8x384xf32>
    %30 = vector.extract_strided_slice %29 {offsets = [0, 0], sizes = [8, 128], strides = [1, 1]} : vector<8x384xf32> to vector<8x128xf32>
    %31 = arith.negf %30 : vector<8x128xf32>
    %32 = math.exp %31 : vector<8x128xf32>
    %cst_27 = arith.constant 1.000000e+00 : f32
    %33 = vector.broadcast %cst_27 : f32 to vector<8x128xf32>
    %34 = arith.addf %33, %32 : vector<8x128xf32>
    %35 = arith.divf %33, %34 : vector<8x128xf32>
    %36 = vector.extract_strided_slice %29 {offsets = [0, 128], sizes = [8, 128], strides = [1, 1]} : vector<8x384xf32> to vector<8x128xf32>
    %37 = math.tanh %36 : vector<8x128xf32>
    %38 = vector.extract_strided_slice %29 {offsets = [0, 256], sizes = [8, 128], strides = [1, 1]} : vector<8x384xf32> to vector<8x128xf32>
    %39 = arith.negf %38 : vector<8x128xf32>
    %40 = math.exp %39 : vector<8x128xf32>
    %cst_28 = arith.constant 1.000000e+00 : f32
    %41 = vector.broadcast %cst_28 : f32 to vector<8x128xf32>
    %42 = arith.addf %41, %40 : vector<8x128xf32>
    %43 = arith.divf %41, %42 : vector<8x128xf32>
    %44 = arith.mulf %35, %37 : vector<8x128xf32>
    %45 = math.tanh %44 : vector<8x128xf32>
    %46 = arith.mulf %43, %45 : vector<8x128xf32>
    %c0_29 = arith.constant 0 : index
    %c0_30 = arith.constant 0 : index
    %47 = vector.load %arg10[%c0_29, %c0_30] : memref<1x128xf32, #tpu.memory_space<vmem>>, vector<1x128xf32>
    %48 = vector.broadcast %47 : vector<1x128xf32> to vector<8x128xf32>
    %49 = arith.mulf %46, %48 : vector<8x128xf32>
    %cst_31 = arith.constant dense<0.000000e+00> : vector<8xf32>
    %50 = vector.multi_reduction <add>, %49, %cst_31 [1] : vector<8x128xf32> to vector<8xf32>
    %51 = vector.shape_cast %50 : vector<8xf32> to vector<8x1xf32>
    %c0_32 = arith.constant 0 : index
    %c0_33 = arith.constant 0 : index
    %52 = vector.load %arg11[%c0_32, %c0_33] : memref<1x1xf32, #tpu.memory_space<vmem>>, vector<1x1xf32>
    %53 = vector.broadcast %52 : vector<1x1xf32> to vector<8x1xf32>
    %54 = arith.addf %51, %53 : vector<8x1xf32>
    %c0_34 = arith.constant 0 : index
    %c0_35 = arith.constant 0 : index
    %55 = vector.load %arg12[%c0_34, %c0_35] : memref<8x1xf32, #tpu.memory_space<vmem>>, vector<8x1xf32>
    tpu.vector_store %arg12[%c0_34, %c0_35], %54 {strides = array<i32>} : memref<8x1xf32, #tpu.memory_space<vmem>>, vector<8x1xf32>,
    return
  }
  func.func @transform_0(%arg0: i32) -> (i32, i32) {
    %c0_i32 = arith.constant 0 : i32
    %c0_i32_0 = arith.constant 0 : i32
    return %arg0, %c0_i32 : i32, i32
  }
  func.func @transform_1(%arg0: i32) -> (i32, i32) {
    %c0_i32 = arith.constant 0 : i32
    %c0_i32_0 = arith.constant 0 : i32
    return %arg0, %c0_i32 : i32, i32
  }
  func.func @transform_2(%arg0: i32) -> (i32, i32) {
    %c0_i32 = arith.constant 0 : i32
    %c0_i32_0 = arith.constant 0 : i32
    return %arg0, %c0_i32 : i32, i32
  }
  func.func @transform_3(%arg0: i32) -> (i32, i32) {
    %c0_i32 = arith.constant 0 : i32
    %c0_i32_0 = arith.constant 0 : i32
    %c0_i32_1 = arith.constant 0 : i32
    return %c0_i32, %c0_i32_0 : i32, i32
  }
  func.func @transform_4(%arg0: i32) -> (i32, i32) {
    %c0_i32 = arith.constant 0 : i32
    %c0_i32_0 = arith.constant 0 : i32
    %c0_i32_1 = arith.constant 0 : i32
    return %c0_i32, %c0_i32_0 : i32, i32
  }
  func.func @transform_5(%arg0: i32) -> (i32, i32) {
    %c0_i32 = arith.constant 0 : i32
    %c0_i32_0 = arith.constant 0 : i32
    %c0_i32_1 = arith.constant 0 : i32
    return %c0_i32, %c0_i32_0 : i32, i32
  }
  func.func @transform_6(%arg0: i32) -> (i32, i32) {
    %c0_i32 = arith.constant 0 : i32
    %c0_i32_0 = arith.constant 0 : i32
    %c0_i32_1 = arith.constant 0 : i32
    return %c0_i32, %c0_i32_0 : i32, i32
  }
  func.func @transform_7(%arg0: i32) -> (i32, i32) {
    %c0_i32 = arith.constant 0 : i32
    %c0_i32_0 = arith.constant 0 : i32
    %c0_i32_1 = arith.constant 0 : i32
    return %c0_i32, %c0_i32_0 : i32, i32
  }
  func.func @transform_8(%arg0: i32) -> (i32, i32) {
    %c0_i32 = arith.constant 0 : i32
    %c0_i32_0 = arith.constant 0 : i32
    %c0_i32_1 = arith.constant 0 : i32
    return %c0_i32, %c0_i32_0 : i32, i32
  }
  func.func @transform_9(%arg0: i32) -> (i32, i32) {
    %c0_i32 = arith.constant 0 : i32
    %c0_i32_0 = arith.constant 0 : i32
    %c0_i32_1 = arith.constant 0 : i32
    return %c0_i32, %c0_i32_0 : i32, i32
  }
  func.func @transform_10(%arg0: i32) -> (i32, i32) {
    %c0_i32 = arith.constant 0 : i32
    %c0_i32_0 = arith.constant 0 : i32
    %c0_i32_1 = arith.constant 0 : i32
    return %c0_i32, %c0_i32_0 : i32, i32
  }
  func.func @transform_11(%arg0: i32) -> (i32, i32) {
    %c0_i32 = arith.constant 0 : i32
    %c0_i32_0 = arith.constant 0 : i32
    return %arg0, %c0_i32 : i32, i32
  }
}

</mosaic_0001>

<bundles_post_ra>
// kernel: base_model_forward.1
= control target key start
LH: loop header
LB: loop body
LE: loop exit
PB: predicated region body
PF: predicated region fallthrough
CT: control target
= control target key end

     0   :  { %s2314_s0 = inlined_call_operand.vmem [shape: bf16[8,768], index: 0, kind: input, shape index: {}]   ;;  %s2315_s1 = inlined_call_operand.vmem [shape: bf16[8,768], index: 1, kind: input, shape index: {}]   ;;  %s2316_s2 = inlined_call_operand.vmem [shape: bf16[8,40], index: 2, kind: input, shape index: {}]   ;;  %s2317_s3 = inlined_call_operand.hbm [shape: bf16[768,128], index: 3, kind: input, shape index: {}]   ;;  %s2318_s4 = inlined_call_operand.vmem [shape: f32[1,128], index: 4, kind: input, shape index: {}]   ;;  %s2319_s5 = inlined_call_operand.hbm [shape: bf16[128,384], index: 5, kind: input, shape index: {}]   ;;  %s2320_s6 = inlined_call_operand.hbm [shape: bf16[128,384], index: 6, kind: input, shape index: {}]   ;;  %s2321_s7 = inlined_call_operand.vmem [shape: bf16[40,384], index: 7, kind: input, shape index: {}]   ;;  %s2322_s8 = inlined_call_operand.vmem [shape: f32[1,384], index: 8, kind: input, shape index: {}]   ;;  %s2323_s9 = inlined_call_operand.vmem [shape: f32[1,128], index: 9, kind: input, shape index: {}]   ;;  %s2324_s10 = inlined_call_operand.<no memory space> [shape: f32[1,1], index: 10, kind: input, shape index: {}]   ;;  %s2325_s11 = inlined_call_operand.vmem [shape: f32[8,1], index: 11, kind: output, shape index: {}]  }
   0x1   :  { %v16_v0 = vstv %s2324_s10 }
   0x2   :  { %17 = vst [vmem:[#allocation2] sm:$0x1] %v16_v0 }
   0x3   :  { %18 = vsyncpa [#allocation4], 0 }
   0x4   :  { %19 = vsyncpa [#allocation6], 0  ;;  %s2008_s19 = smov [#allocation5]  }
   0x5   :  { %s45_s20 = sshll.u32 %s2008_s19, 4  ;;  %s46_s20 = int_to_ptr.vmem [resolvable:$true] %s45_s20 }
   0x6   :  { %s1952_s21 = scalar_lea.vmem %s46_s20, 3072  ;;  %p1957_p1 = scmp.lt.s32.totalorder %s46_s20, %s46_s20 }
   0x7   :  { %p1953_p0 = scmp.ne.s32.totalorder %s46_s20, %s1952_s21  ;;  %p1958_p2 = scmp.lt.s32.totalorder %s1952_s21, %s1952_s21 }
   0x9   :  { %p1959_p3 = por %p1958_p2, %p1957_p1 }
   0xb   :  { %p1960_p4 = pnand %p1959_p3, %p1953_p0 }
   0xd   :  { %1963 = shalt.err (!%p1960_p4)
}
   0xe   :  { %s2009_s22 = smov 192   ;;  %s2010_s23 = smov 12  }
   0xf   :  { %51 = dma.hbm_to_vmem [thread:$0]  %s2319_s5, 3072, %s46_s20, [#allocation6], %s2009_s22, %s2009_s22, %s2010_s23  }
  0x10   :  { %s2011_s10 = smov [#allocation3]  }
  0x11   :  { %s31_s26 = sshll.u32 %s2011_s10, 4  ;;  %s32_s26 = int_to_ptr.vmem [resolvable:$true] %s31_s26 }
  0x12   :  { %s1972_s27 = scalar_lea.vmem %s32_s26, 6144  ;;  %p1977_p6 = scmp.lt.s32.totalorder %s32_s26, %s32_s26 }
  0x13   :  { %p1973_p5 = scmp.ne.s32.totalorder %s32_s26, %s1972_s27  ;;  %p1978_p7 = scmp.lt.s32.totalorder %s1972_s27, %s1972_s27 }
  0x15   :  { %p1979_p8 = por %p1978_p7, %p1977_p6 }
  0x17   :  { %p1980_p9 = pnand %p1979_p8, %p1973_p5 }
  0x19   :  { %1983 = shalt.err (!%p1980_p9)
}
  0x1a   :  { %s2012_s28 = smov 64   ;;  %s2013_s29 = smov 4  }
  0x1b   :  { %37 = dma.hbm_to_vmem [thread:$0]  %s2317_s3, 6144, %s32_s26, [#allocation4], %s2012_s28, %s2012_s28, %s2013_s29  }
  0x1c   :  { %s2014_s13 = smov [#allocation7]  }
  0x1d   :  { %s57_s14 = sshll.u32 %s2014_s13, 4  ;;  %s58_s14 = int_to_ptr.vmem [resolvable:$true] %s57_s14 }
  0x1e   :  { %s1992_s5 = scalar_lea.vmem %s58_s14, 3072  ;;  %p1997_p11 = scmp.lt.s32.totalorder %s58_s14, %s58_s14 }
  0x1f   :  { %p1993_p10 = scmp.ne.s32.totalorder %s58_s14, %s1992_s5  ;;  %p1998_p12 = scmp.lt.s32.totalorder %s1992_s5, %s1992_s5 }
  0x21   :  { %p1999_p13 = por %p1998_p12, %p1997_p11 }
  0x23   :  { %p2000_p0 = pnand %p1999_p13, %p1993_p10 }
  0x25   :  { %2003 = shalt.err (!%p2000_p0)
}
  0x26   :  { %63 = dma.hbm_to_vmem [thread:$0]  %s2320_s6, 3072, %s58_s14, [#allocation6], %s2009_s22, %s2009_s22, %s2010_s23  }
  0x27   :  { %2004 = dma.done.wait [#allocation4], 6144  }
  0x28   :  { %2005 = vsyncadd [#allocation4], 4294961152 }
  0x29   :  { %2006 = dma.done.wait [#allocation6], 6144  }
  0x2a   :  { %2007 = vsyncadd [#allocation6], 4294961152  ;;  %v2090_v1 = vld [vmem:[#allocation3 + $0x78] sm:$0xff]   ;;  %v2101_v5 = vld [vmem:[#allocation3 + $0x70] sm:$0xff]   ;;  %vm2017_vm0 = vmmov 0   ;;  %vm1302_vm1 = vcmask 1043456  }
  0x2b   :  { %v2092_v2 = vld [vmem:[#allocation3 + $0xf8] sm:$0xff]   ;;  %1583 = vmatprep.subr.bf16.mxu0 %v2090_v1  ;;  %v2104_v6 = vld [vmem:[#allocation3 + $0xf0] sm:$0xff]   ;;  %v2113_v9 = vld [vmem:[#allocation3 + $0x68] sm:$0xff]   ;;  %vm1298_vm2 = vcmask 326656   ;;  %vm1450_vm3 = vcmask 7168  }
  0x2c   :  { %v2095_v3 = vld [vmem:[#allocation3 + $0x38] sm:$0xff]   ;;  %1605 = vmatprep.subr.bf16.mxu1 %v2092_v2  ;;  %v2107_v7 = vld [vmem:[#allocation3 + $0x30] sm:$0xff]   ;;  %v2116_v10 = vld [vmem:[#allocation3 + $0xe8] sm:$0xff]  }
  0x2d   :  { %v2098_v4 = vld [vmem:[#allocation3 + $0xb8] sm:$0xff]   ;;  %1584 = vmatpush3.bf16.msra.mxu0 %v2095_v3  ;;  %v2110_v8 = vld [vmem:[#allocation3 + $0xb0] sm:$0xff]   ;;  %v2119_v11 = vld [vmem:[#allocation3 + $0x28] sm:$0xff]  }
  0x2e   :  { %1606 = vmatpush3.bf16.msra.mxu1 %v2098_v4  ;;  %1585 = vmatprep.subr.bf16.mxu0 %v2101_v5  ;;  %v2122_v12 = vld [vmem:[#allocation3 + $0xa8] sm:$0xff]   ;;  %v2125_v13 = vld [vmem:[#allocation3 + $0x60] sm:$0xff]   ;;  %v2137_v17 = vld [vmem:[#allocation3 + $0x58] sm:$0xff]  }
  0x2f   :  { %1607 = vmatprep.subr.bf16.mxu1 %v2104_v6  ;;  %v2128_v14 = vld [vmem:[#allocation3 + $0xe0] sm:$0xff]   ;;  %v2140_v18 = vld [vmem:[#allocation3 + $0xd8] sm:$0xff]   ;;  %v2149_v21 = vld [vmem:[#allocation3 + $0x50] sm:$0xff]  }
  0x30   :  { %v2131_v15 = vld [vmem:[#allocation3 + $0x20] sm:$0xff]   ;;  %v2143_v19 = vld [vmem:[#allocation3 + $0x18] sm:$0xff]   ;;  %v2152_v22 = vld [vmem:[#allocation3 + $0xd0] sm:$0xff]  }
  0x31   :  { %1586 = vmatpush3.bf16.msra.mxu0 %v2107_v7  ;;  %v2134_v16 = vld [vmem:[#allocation3 + $0xa0] sm:$0xff]   ;;  %v2146_v20 = vld [vmem:[#allocation3 + $0x98] sm:$0xff]   ;;  %v2155_v23 = vld [vmem:[#allocation3 + $0x10] sm:$0xff]  }
  0x32   :  { %1608 = vmatpush3.bf16.msra.mxu1 %v2110_v8  ;;  %1587 = vmatprep.subr.bf16.mxu0 %v2113_v9  ;;  %v2158_v24 = vld [vmem:[#allocation3 + $0x90] sm:$0xff]   ;;  %v2161_v25 = vld [vmem:[#allocation3 + $0x48] sm:$0xff]   ;;  %v2173_v29 = vld [vmem:[#allocation3 + $0x40] sm:$0xff]  }
  0x33   :  { %1609 = vmatprep.subr.bf16.mxu1 %v2116_v10  ;;  %v2164_v26 = vld [vmem:[#allocation3 + $0xc8] sm:$0xff]   ;;  %v2176_v30 = vld [vmem:[#allocation3 + $0xc0] sm:$0xff]   ;;  %v1833_v39 = vld [vmem:[#allocation3 + $0x178] sm:$0xff]  }
  0x34   :  { %v2167_v27 = vld [vmem:[#allocation3 + $0x8] sm:$0xff]   ;;  %v2179_v31 = vld [vmem:[#allocation3] sm:$0xff]   ;;  %v2193_v40 = vld [vmem:[#allocation3 + $0x138] sm:$0xff]  }
  0x35   :  { %1588 = vmatpush3.bf16.msra.mxu0 %v2119_v11  ;;  %v2170_v28 = vld [vmem:[#allocation3 + $0x88] sm:$0xff]   ;;  %v2182_v32 = vld [vmem:[#allocation3 + $0x80] sm:$0xff]   ;;  %v2195_v41 = vld [vmem:[#allocation3 + $0x170] sm:$0xff]  }
  0x36   :  { %1610 = vmatpush3.bf16.msra.mxu1 %v2122_v12  ;;  %1589 = vmatprep.subr.bf16.mxu0 %v2125_v13  ;;  %v82_v33 = vld [vmem:[%s2314_s0] sm:$0xff]  ;;  %v83_v34 = vld [vmem:[%s2314_s0 + $0x8] sm:$0xff]  ;;  %v1836_v42 = vld [vmem:[#allocation3 + $0x130] sm:$0xff]  }
  0x37   :  { %1611 = vmatprep.subr.bf16.mxu1 %v2128_v14  ;;  %v1459_v35 = vcombine.low %v82_v33, %v82_v33  ;;  %v1460_v36 = vcombine.high %v82_v33, %v82_v33  ;;  %v1461_v37 = vcombine.low %v83_v34, %v83_v34  ;;  %v1462_v38 = vcombine.high %v83_v34, %v83_v34  ;;  %v1837_v43 = vld [vmem:[#allocation3 + $0x168] sm:$0xff]   ;;  %v1839_v45 = vld [vmem:[#allocation3 + $0x160] sm:$0xff]   ;;  %v1841_v47 = vld [vmem:[#allocation3 + $0x158] sm:$0xff]  }
  0x38   :  { %v1838_v44 = vld [vmem:[#allocation3 + $0x128] sm:$0xff]   ;;  %v1840_v46 = vld [vmem:[#allocation3 + $0x120] sm:$0xff]   ;;  %v1842_v49 = vld [vmem:[#allocation3 + $0x118] sm:$0xff]  }
  0x39   :  { %1590 = vmatpush3.bf16.msra.mxu0 %v2131_v15  ;;  %529 = vmatprep.mubr.bf16.mxu0 %v1460_v36  ;;  %v84_v48 = vld [vmem:[%s2314_s0 + $0x10] sm:$0xff]  ;;  %v618_v52 = vld [vmem:[%s2315_s1] sm:$0xff]  ;;  %v619_v59 = vld [vmem:[%s2315_s1 + $0x8] sm:$0xff] }
  0x3a   :  { %1612 = vmatpush3.bf16.msra.mxu1 %v2134_v16  ;;  %1591 = vmatprep.subr.bf16.mxu0 %v2137_v17  ;;  %v1843_v50 = vld [vmem:[#allocation3 + $0x150] sm:$0xff]   ;;  %v1464_v51 = vcombine.high %v84_v48, %v84_v48  ;;  %v1514_v53 = vcombine.high %v618_v52, %v618_v52  ;;  %v1845_v55 = vld [vmem:[#allocation3 + $0x148] sm:$0xff]   ;;  %v1847_v57 = vld [vmem:[#allocation3 + $0x140] sm:$0xff]   ;;  %v1513_v61 = vcombine.low %v618_v52, %v618_v52 }
  0x3b   :  { %1613 = vmatprep.subr.bf16.mxu1 %v2140_v18  ;;  %569 = vmatprep.mubr.bf16.mxu1 %v1462_v38  ;;  %v1844_v54 = vld [vmem:[#allocation3 + $0x110] sm:$0xff]   ;;  %v1846_v56 = vld [vmem:[#allocation3 + $0x108] sm:$0xff]   ;;  %v1848_v58 = vld [vmem:[#allocation3 + $0x100] sm:$0xff]   ;;  %v1463_v62 = vcombine.low %v84_v48, %v84_v48  ;;  %v1516_v63 = vcombine.high %v619_v59, %v619_v59 }
  0x3c   :  { %v620_v60 = vld [vmem:[%s2315_s1 + $0x10] sm:$0xff] }
  0x3d   :  { %1592 = vmatpush3.bf16.msra.mxu0 %v2143_v19  ;;  %v1518_v0 = vcombine.high %v620_v60, %v620_v60 }
  0x3e   :  { %1614 = vmatpush3.bf16.msra.mxu1 %v2146_v20  ;;  %1593 = vmatprep.subr.bf16.mxu0 %v2149_v21 }
  0x3f   :  { %1615 = vmatprep.subr.bf16.mxu1 %v2152_v22 }
  0x41   :  { %1594 = vmatpush3.bf16.msra.mxu0 %v2155_v23 }
  0x42   :  { %1616 = vmatpush3.bf16.msra.mxu1 %v2158_v24  ;;  %1595 = vmatprep.subr.bf16.mxu0 %v2161_v25 }
  0x43   :  { %1617 = vmatprep.subr.bf16.mxu1 %v2164_v26 }
  0x45   :  { %1596 = vmatpush3.bf16.msra.mxu0 %v2167_v27 }
  0x46   :  { %1618 = vmatpush3.bf16.msra.mxu1 %v2170_v28  ;;  %1597 = vmatprep.subr.bf16.mxu0 %v2173_v29 }
  0x47   :  { %1619 = vmatprep.subr.bf16.mxu1 %v2176_v30 }
  0x49   :  { %1598 = vmatpush3.bf16.msra.mxu0 %v2179_v31 }
  0x4a   :  { %1620 = vmatpush3.bf16.msra.mxu1 %v2182_v32  ;;  %1627 = vmatprep.subr.bf16.mxu0 %v1833_v39 }
  0x4b   :  { %1649 = vmatprep.subr.bf16.mxu1 %v2090_v1  ;;  %v1517_v1 = vcombine.low %v620_v60, %v620_v60 }
  0x4c   :  { %530 = vmatmul.mubr.bf16.vlgmr.msra.gmra.mxu0 %v1459_v35 }
  0x4d   :  { %570 = vmatmul.mubr.bf16.vlgmr.msra.gmra.mxu1 %v1461_v37  ;;  %1628 = vmatpush3.bf16.msra.mxu0 %v2193_v40 }
  0x4e   :  { %1650 = vmatpush3.bf16.msra.mxu1 %v2095_v3  ;;  %1629 = vmatprep.subr.bf16.mxu0 %v2195_v41  ;;  %v1857_v3 = vld [vmem:[#allocation7 + $0xa8] ss:$12 sps:$4 sm:$0xff]  }
  0x4f   :  { %1651 = vmatprep.subr.bf16.mxu1 %v2101_v5  ;;  %609 = vmatprep.mubr.bf16.mxu0 %v1464_v51  ;;  %v2015_v5 = vmov 0.0  }
  0x50   :  { %674 = vmatprep.mubr.bf16.mxu1 %v1514_v53 }
  0x51   :  { %1630 = vmatpush3.bf16.msra.mxu0 %v1836_v42 }
  0x52   :  { %1652 = vmatpush3.bf16.msra.mxu1 %v2107_v7  ;;  %1631 = vmatprep.subr.bf16.mxu0 %v1837_v43  ;;  %v1863_v7 = vld [vmem:[#allocation7 + $0x94] ss:$12 sps:$4 sm:$0xff]  }
  0x53   :  { %1653 = vmatprep.subr.bf16.mxu1 %v2113_v9  ;;  %v1864_v9 = vld [vmem:[#allocation7 + $0x98] ss:$12 sps:$4 sm:$0xff]  }
  0x55   :  { %1632 = vmatpush3.bf16.msra.mxu0 %v1838_v44 }
  0x56   :  { %1654 = vmatpush3.bf16.msra.mxu1 %v2119_v11  ;;  %1633 = vmatprep.subr.bf16.mxu0 %v1839_v45  ;;  %v1865_v11 = vld [vmem:[#allocation7 + $0x78] ss:$12 sps:$4 sm:$0xff]  }
  0x57   :  { %1655 = vmatprep.subr.bf16.mxu1 %v2125_v13  ;;  %v1871_v13 = vld [vmem:[#allocation7 + $0x64] ss:$12 sps:$4 sm:$0xff]  }
  0x59   :  { %1634 = vmatpush3.bf16.msra.mxu0 %v1840_v46 }
  0x5a   :  { %1656 = vmatpush3.bf16.msra.mxu1 %v2131_v15  ;;  %1635 = vmatprep.subr.bf16.mxu0 %v1841_v47  ;;  %v1872_v15 = vld [vmem:[#allocation7 + $0x68] ss:$12 sps:$4 sm:$0xff]  }
  0x5b   :  { %1657 = vmatprep.subr.bf16.mxu1 %v2137_v17  ;;  %v1873_v17 = vld [vmem:[#allocation7 + $0x48] ss:$12 sps:$4 sm:$0xff]  }
  0x5d   :  { %1636 = vmatpush3.bf16.msra.mxu0 %v1842_v49 }
  0x5e   :  { %1658 = vmatpush3.bf16.msra.mxu1 %v2143_v19  ;;  %1637 = vmatprep.subr.bf16.mxu0 %v1843_v50  ;;  %v1879_v19 = vld [vmem:[#allocation7 + $0x34] ss:$12 sps:$4 sm:$0xff]  }
  0x5f   :  { %1659 = vmatprep.subr.bf16.mxu1 %v2149_v21  ;;  %v1880_v21 = vld [vmem:[#allocation7 + $0x38] ss:$12 sps:$4 sm:$0xff]  }
  0x61   :  { %1638 = vmatpush3.bf16.msra.mxu0 %v1844_v54 }
  0x62   :  { %1660 = vmatpush3.bf16.msra.mxu1 %v2155_v23  ;;  %1639 = vmatprep.subr.bf16.mxu0 %v1845_v55  ;;  %v1881_v23 = vld [vmem:[#allocation7 + $0x18] ss:$12 sps:$4 sm:$0xff]  }
  0x63   :  { %1661 = vmatprep.subr.bf16.mxu1 %v2161_v25  ;;  %v1887_v25 = vld [vmem:[#allocation7 + $0x4] ss:$12 sps:$4 sm:$0xff]  }
  0x65   :  { %1640 = vmatpush3.bf16.msra.mxu0 %v1846_v56 }
  0x66   :  { %1662 = vmatpush3.bf16.msra.mxu1 %v2167_v27  ;;  %1641 = vmatprep.subr.bf16.mxu0 %v1847_v57  ;;  %v1888_v27 = vld [vmem:[#allocation7 + $0x8] ss:$12 sps:$4 sm:$0xff]  }
  0x67   :  { %1663 = vmatprep.subr.bf16.mxu1 %v2173_v29  ;;  %v2016_v29 = vmov 0  }
  0x69   :  { %1642 = vmatpush3.bf16.msra.mxu0 %v1848_v58 }
  0x6a   :  { %1664 = vmatpush3.bf16.msra.mxu1 %v2179_v31  ;;  %1671 = vmatprep.subr.bf16.mxu0 %v2092_v2  ;;  %v1515_v2 = vcombine.low %v619_v59, %v619_v59 }
  0x6b   :  { %1693 = vmatprep.subr.bf16.mxu1 %v1833_v39 }
  0x6c   :  { %610 = vmatmul.mubr.bf16.vlgmr.msra.gmra.mxu0 %v1463_v62 }
  0x6d   :  { %675 = vmatmul.mubr.bf16.vlgmr.msra.gmra.mxu1 %v1513_v61  ;;  %1672 = vmatpush3.bf16.msra.mxu0 %v2098_v4  ;;  %v1859_v4 = vld [vmem:[#allocation7 + $0xac] ss:$12 sps:$4 sm:$0xff]  }
  0x6e   :  { %1694 = vmatpush3.bf16.msra.mxu1 %v2193_v40  ;;  %1673 = vmatprep.subr.bf16.mxu0 %v2104_v6  ;;  %v1860_v6 = vld [vmem:[#allocation7 + $0xb0] ss:$12 sps:$4 sm:$0xff]  }
  0x6f   :  { %1695 = vmatprep.subr.bf16.mxu1 %v2195_v41  ;;  %714 = vmatprep.mubr.bf16.mxu0 %v1516_v63 }
  0x70   :  { %754 = vmatprep.mubr.bf16.mxu1 %v1518_v0 }
  0x71   :  { %1674 = vmatpush3.bf16.msra.mxu0 %v2110_v8  ;;  %v1861_v8 = vld [vmem:[#allocation7 + $0x90] ss:$12 sps:$4 sm:$0xff]  }
  0x72   :  { %1696 = vmatpush3.bf16.msra.mxu1 %v1836_v42  ;;  %1675 = vmatprep.subr.bf16.mxu0 %v2116_v10  ;;  %v1867_v10 = vld [vmem:[#allocation7 + $0x7c] ss:$12 sps:$4 sm:$0xff]  }
  0x73   :  { %1697 = vmatprep.subr.bf16.mxu1 %v1837_v43 }
  0x75   :  { %1676 = vmatpush3.bf16.msra.mxu0 %v2122_v12  ;;  %v1868_v12 = vld [vmem:[#allocation7 + $0x80] ss:$12 sps:$4 sm:$0xff]  }
  0x76   :  { %1698 = vmatpush3.bf16.msra.mxu1 %v1838_v44  ;;  %1677 = vmatprep.subr.bf16.mxu0 %v2128_v14  ;;  %v1869_v14 = vld [vmem:[#allocation7 + $0x60] ss:$12 sps:$4 sm:$0xff]  }
  0x77   :  { %1699 = vmatprep.subr.bf16.mxu1 %v1839_v45 }
  0x79   :  { %1678 = vmatpush3.bf16.msra.mxu0 %v2134_v16  ;;  %v1875_v16 = vld [vmem:[#allocation7 + $0x4c] ss:$12 sps:$4 sm:$0xff]  }
  0x7a   :  { %1700 = vmatpush3.bf16.msra.mxu1 %v1840_v46  ;;  %1679 = vmatprep.subr.bf16.mxu0 %v2140_v18  ;;  %v1876_v18 = vld [vmem:[#allocation7 + $0x50] ss:$12 sps:$4 sm:$0xff]  }
  0x7b   :  { %1701 = vmatprep.subr.bf16.mxu1 %v1841_v47 }
  0x7d   :  { %1680 = vmatpush3.bf16.msra.mxu0 %v2146_v20  ;;  %v1877_v20 = vld [vmem:[#allocation7 + $0x30] ss:$12 sps:$4 sm:$0xff]  }
  0x7e   :  { %1702 = vmatpush3.bf16.msra.mxu1 %v1842_v49  ;;  %1681 = vmatprep.subr.bf16.mxu0 %v2152_v22  ;;  %v1883_v22 = vld [vmem:[#allocation7 + $0x1c] ss:$12 sps:$4 sm:$0xff]  }
  0x7f   :  { %1703 = vmatprep.subr.bf16.mxu1 %v1843_v50 }
  0x81   :  { %1682 = vmatpush3.bf16.msra.mxu0 %v2158_v24  ;;  %v1884_v24 = vld [vmem:[#allocation7 + $0x20] ss:$12 sps:$4 sm:$0xff]  }
  0x82   :  { %1704 = vmatpush3.bf16.msra.mxu1 %v1844_v54  ;;  %1683 = vmatprep.subr.bf16.mxu0 %v2164_v26  ;;  %v1885_v26 = vld [vmem:[#allocation7] ss:$12 sps:$4 sm:$0xff]  }
  0x83   :  { %1705 = vmatprep.subr.bf16.mxu1 %v1845_v55 }
  0x85   :  { %1684 = vmatpush3.bf16.msra.mxu0 %v2170_v28  ;;  %v1891_v28 = vld [vmem:[#allocation5 + $0xac] ss:$12 sps:$4 sm:$0xff]  }
  0x86   :  { %1706 = vmatpush3.bf16.msra.mxu1 %v1846_v56  ;;  %1685 = vmatprep.subr.bf16.mxu0 %v2176_v30 }
  0x87   :  { %1707 = vmatprep.subr.bf16.mxu1 %v1847_v57 }
  0x89   :  { %1686 = vmatpush3.bf16.msra.mxu0 %v2182_v32  ;;  %v1458_v32 = vld [vmem:[%s2318_s4] ss:$0 sm:$0xff] }
  0x8a   :  { %1708 = vmatpush3.bf16.msra.mxu1 %v1848_v58  ;;  %957 = vmatprep.subr.bf16.mxu0 %v1859_v4  ;;  %v1889_v4 = vld [vmem:[#allocation5 + $0xa8] ss:$12 sps:$4 sm:$0xff]  }
  0x8b   :  { %1737 = vmatprep.subr.bf16.mxu1 %v2015_v5 }
  0x8c   :  { %715 = vmatmul.mubr.bf16.vlgmr.msra.gmra.mxu0 %v1515_v2 }
  0x8d   :  { %755 = vmatmul.mubr.bf16.vlgmr.msra.gmra.mxu1 %v1517_v1  ;;  %958 = vmatpush1.bf16.msra.mxu0 %v1857_v3 }
  0x8e   :  { %1738 = vmatpush3.bf16.msra.mxu1 %v1860_v6  ;;  %959 = vmatprep.subr.bf16.mxu0 %v1863_v7  ;;  %v1892_v6 = vld [vmem:[#allocation5 + $0xb0] ss:$12 sps:$4 sm:$0xff]  }
  0x8f   :  { %1739 = vmatprep.subr.bf16.mxu1 %v2015_v5  ;;  %989 = vmatprep.mubr.bf16.mxu0 %v2016_v29 }
  0x90   :  { %1753 = vmatprep.mubr.msk.bf16.mxu1 %vm2017_vm0, %v2015_v5 }
  0x91   :  { %960 = vmatpush1.bf16.msra.mxu0 %v1861_v8  ;;  %v1895_v8 = vld [vmem:[#allocation5 + $0x94] ss:$12 sps:$4 sm:$0xff]  }
  0x92   :  { %1740 = vmatpush3.bf16.msra.mxu1 %v1864_v9  ;;  %961 = vmatprep.subr.bf16.mxu0 %v1867_v10  ;;  %v1893_v9 = vld [vmem:[#allocation5 + $0x90] ss:$12 sps:$4 sm:$0xff]   ;;  %v1896_v10 = vld [vmem:[#allocation5 + $0x98] ss:$12 sps:$4 sm:$0xff]  }
  0x93   :  { %1741 = vmatprep.subr.bf16.mxu1 %v2015_v5 }
  0x95   :  { %962 = vmatpush1.bf16.msra.mxu0 %v1865_v11  ;;  %v1899_v11 = vld [vmem:[#allocation5 + $0x7c] ss:$12 sps:$4 sm:$0xff]  }
  0x96   :  { %1742 = vmatpush3.bf16.msra.mxu1 %v1868_v12  ;;  %963 = vmatprep.subr.bf16.mxu0 %v1871_v13  ;;  %v1897_v12 = vld [vmem:[#allocation5 + $0x78] ss:$12 sps:$4 sm:$0xff]   ;;  %v1900_v13 = vld [vmem:[#allocation5 + $0x80] ss:$12 sps:$4 sm:$0xff]  }
  0x97   :  { %1743 = vmatprep.subr.bf16.mxu1 %v2015_v5 }
  0x99   :  { %964 = vmatpush1.bf16.msra.mxu0 %v1869_v14  ;;  %v1903_v14 = vld [vmem:[#allocation5 + $0x64] ss:$12 sps:$4 sm:$0xff]  }
  0x9a   :  { %1744 = vmatpush3.bf16.msra.mxu1 %v1872_v15  ;;  %965 = vmatprep.subr.bf16.mxu0 %v1875_v16  ;;  %v1901_v15 = vld [vmem:[#allocation5 + $0x60] ss:$12 sps:$4 sm:$0xff]   ;;  %v1904_v16 = vld [vmem:[#allocation5 + $0x68] ss:$12 sps:$4 sm:$0xff]  }
  0x9b   :  { %1745 = vmatprep.subr.bf16.mxu1 %v2015_v5 }
  0x9d   :  { %966 = vmatpush1.bf16.msra.mxu0 %v1873_v17  ;;  %v1907_v17 = vld [vmem:[#allocation5 + $0x4c] ss:$12 sps:$4 sm:$0xff]  }
  0x9e   :  { %1746 = vmatpush3.bf16.msra.mxu1 %v1876_v18  ;;  %967 = vmatprep.subr.bf16.mxu0 %v1879_v19  ;;  %v1905_v18 = vld [vmem:[#allocation5 + $0x48] ss:$12 sps:$4 sm:$0xff]   ;;  %v1908_v19 = vld [vmem:[#allocation5 + $0x50] ss:$12 sps:$4 sm:$0xff]  }
  0x9f   :  { %1747 = vmatprep.subr.bf16.mxu1 %v2015_v5 }
  0xa1   :  { %968 = vmatpush1.bf16.msra.mxu0 %v1877_v20  ;;  %v1911_v20 = vld [vmem:[#allocation5 + $0x34] ss:$12 sps:$4 sm:$0xff]  }
  0xa2   :  { %1748 = vmatpush3.bf16.msra.mxu1 %v1880_v21  ;;  %969 = vmatprep.subr.bf16.mxu0 %v1883_v22  ;;  %v1909_v21 = vld [vmem:[#allocation5 + $0x30] ss:$12 sps:$4 sm:$0xff]   ;;  %v1912_v22 = vld [vmem:[#allocation5 + $0x38] ss:$12 sps:$4 sm:$0xff]  }
  0xa3   :  { %1749 = vmatprep.subr.bf16.mxu1 %v2015_v5 }
  0xa5   :  { %970 = vmatpush1.bf16.msra.mxu0 %v1881_v23  ;;  %v1915_v23 = vld [vmem:[#allocation5 + $0x1c] ss:$12 sps:$4 sm:$0xff]  }
  0xa6   :  { %1750 = vmatpush3.bf16.msra.mxu1 %v1884_v24  ;;  %971 = vmatprep.subr.bf16.mxu0 %v1887_v25  ;;  %v1913_v24 = vld [vmem:[#allocation5 + $0x18] ss:$12 sps:$4 sm:$0xff]   ;;  %v1916_v25 = vld [vmem:[#allocation5 + $0x20] ss:$12 sps:$4 sm:$0xff]  }
  0xa7   :  { %1751 = vmatprep.subr.bf16.mxu1 %v2015_v5 }
  0xa9   :  { %972 = vmatpush1.bf16.msra.mxu0 %v1885_v26  ;;  %v1919_v26 = vld [vmem:[#allocation5 + $0x4] ss:$12 sps:$4 sm:$0xff]  }
  0xaa   :  { %1752 = vmatpush3.bf16.msra.mxu1 %v1888_v27  ;;  %1166 = vmatprep.subr.bf16.mxu0 %v1891_v28  ;;  %v1256_v27 = vld [vmem:[%s2321_s7 + $0x30] sm:$0xff] }
  0xab   :  { %1757 = vmatprep.subr.bf16.mxu1 %v2015_v5  ;;  %v1917_v28 = vld [vmem:[#allocation5] ss:$12 sps:$4 sm:$0xff]  }
 0x10c   :  { %v1599_v30 = vpop.f32.mrf.mxu0 }
 0x10d   :  { %v1621_v31 = vpop.f32.mrf.mxu1 }
 0x10e   :  { %v1600_v33 = vpop.f32.mrf.mxu0 }
 0x10f   :  { %v1622_v34 = vpop.f32.mrf.mxu1  ;;  %v1601_v35 = vadd.f32 %v1600_v33, %v1599_v30  ;;  %v1920_v30 = vld [vmem:[#allocation5 + $0x8] ss:$12 sps:$4 sm:$0xff]   ;;  %v1573_v33 = vcombine.low %v1256_v27, %v1256_v27 }
 0x110   :  { %v1623_v36 = vadd.f32 %v1622_v34, %v1621_v31  ;;  %v1602_v37 = vpop.f32.mrf.mxu0  ;;  %v1923_v34 = vld [vmem:[%s2321_s7 + $0x38] ss:$0 sps:$4 sm:$0xff]  }
 0x111   :  { %v1624_v38 = vpop.f32.mrf.mxu1  ;;  %v532_v39 = vadd.f32 %v1601_v35, %v1458_v32  ;;  %v1310_v37 = vsel %vm1302_vm1, %v1923_v34, 0  ;;  %v1581_v34 = vld [vmem:[%s2323_s9] ss:$0 sm:$0xff] }
 0x112   :  { %v1603_v40 = vpop.f32.mrf.mxu0  ;;  %v1926_v38 = vld [vmem:[%s2321_s7 + $0x1c] ss:$12 sps:$4 sm:$0xff]  }
 0x113   :  { %v1625_v41 = vpop.f32.mrf.mxu1  ;;  %v572_v42 = vadd.f32 %v1623_v36, %v532_v39  ;;  %v1304_v36 = vsel %vm1302_vm1, %v1573_v33, 0  ;;  %v1924_v39 = vld [vmem:[%s2321_s7 + $0x18] ss:$12 sps:$4 sm:$0xff]   ;;  %v1927_v40 = vld [vmem:[%s2321_s7 + $0x20] ss:$12 sps:$4 sm:$0xff]  }
 0x114   :  { %v1930_v41 = vld [vmem:[%s2321_s7 + $0x4] ss:$12 sps:$4 sm:$0xff]  }
 0x12c   :  { %v1643_v44 = vpop.f32.mrf.mxu0 }
 0x12d   :  { %v1665_v43 = vpop.f32.mrf.mxu1 }
 0x12e   :  { %v1644_v46 = vpop.f32.mrf.mxu0 }
 0x12f   :  { %v1666_v45 = vpop.f32.mrf.mxu1  ;;  %v1645_v47 = vadd.f32 %v1644_v46, %v1643_v44 }
 0x130   :  { %v1646_v49 = vpop.f32.mrf.mxu0  ;;  %v1667_v53 = vadd.f32 %v1666_v45, %v1665_v43  ;;  %v1931_v43 = vld [vmem:[%s2321_s7 + $0x8] ss:$12 sps:$4 sm:$0xff]  }
 0x131   :  { %v1668_v48 = vpop.f32.mrf.mxu1  ;;  %v2259_v50 = vadd.f32 %v1645_v47, %v572_v42  ;;  %v1928_v42 = vld [vmem:[%s2321_s7] ss:$12 sps:$4 sm:$0xff]  }
 0x132   :  { %v1647_v52 = vpop.f32.mrf.mxu0  ;;  %v677_v58 = vadd.f32 %v1667_v53, %v1458_v32  ;;  %v1574_v32 = vcombine.high %v1256_v27, %v1256_v27 }
 0x133   :  { %v1669_v51 = vpop.f32.mrf.mxu1  ;;  %v617_v31 = vmax.f32 %v2259_v50, 0.0  ;;  %v1398_v52 = vlaneseq }
 0x135   :  { %v763_v35 = vpack.c.bf16 %v617_v31, %v617_v31 }
 0x14c   :  { %v1687_v55 = vpop.f32.mrf.mxu0 }
 0x14d   :  { %v1709_v54 = vpop.f32.mrf.mxu1 }
 0x14e   :  { %v1688_v57 = vpop.f32.mrf.mxu0 }
 0x14f   :  { %v1710_v56 = vpop.f32.mrf.mxu1  ;;  %v1689_v59 = vadd.f32 %v1688_v57, %v1687_v55 }
 0x150   :  { %v1690_v61 = vpop.f32.mrf.mxu0  ;;  %v1711_v63 = vadd.f32 %v1710_v56, %v1709_v54  ;;  %v1399_v56 = vshrl.u32 %v1398_v52, 7 }
 0x151   :  { %v1712_v60 = vpop.f32.mrf.mxu1  ;;  %v717_v62 = vadd.f32 %v1689_v59, %v677_v58 }
 0x152   :  { %v1691_v1 = vpop.f32.mrf.mxu0  ;;  %v1400_v61 = vsub.s32 0, %v1399_v56 }
 0x153   :  { %v1713_v0 = vpop.f32.mrf.mxu1  ;;  %v757_v2 = vadd.f32 %v1711_v63, %v717_v62  ;;  %v1396_v62 = vld [vmem:[%s2322_s8] sm:$0x7] }
 0x154   :  { %v1401_v0 = vrot.slane %v1396_v62, %v1400_v61 }
 0x155   :  { %v762_v3 = vmax.f32 %v757_v2, 0.0 }
 0x157   :  { %v796_v7 = vpack.c.bf16 %v762_v3, %v762_v3 }
 0x159   :  { %990 = vmatmul.mubr.bf16.vlgmr.msra.gmra.mxu0 %v796_v7  ;;  %1754 = vmatmul.mubr.bf16.vlgmr.msra.gmra.mxu1 %v796_v7 }
 0x15a   :  { %1167 = vmatpush1.bf16.msra.mxu0 %v1889_v4  ;;  %1758 = vmatpush3.bf16.msra.mxu1 %v1892_v6  ;;  %v1408_v4 = vsub.s32 2, %v1399_v56 }
 0x15b   :  { %1168 = vmatprep.subr.bf16.mxu0 %v1895_v8  ;;  %1759 = vmatprep.subr.bf16.mxu1 %v2015_v5 }
 0x15c   :  { %1198 = vmatprep.mubr.bf16.mxu0 %v2016_v29  ;;  %1773 = vmatprep.mubr.msk.bf16.mxu1 %vm2017_vm0, %v2015_v5 }
 0x15e   :  { %1169 = vmatpush1.bf16.msra.mxu0 %v1893_v9  ;;  %1760 = vmatpush3.bf16.msra.mxu1 %v1896_v10 }
 0x15f   :  { %1170 = vmatprep.subr.bf16.mxu0 %v1899_v11  ;;  %1761 = vmatprep.subr.bf16.mxu1 %v2015_v5 }
 0x162   :  { %1171 = vmatpush1.bf16.msra.mxu0 %v1897_v12  ;;  %1762 = vmatpush3.bf16.msra.mxu1 %v1900_v13 }
 0x163   :  { %1172 = vmatprep.subr.bf16.mxu0 %v1903_v14  ;;  %1763 = vmatprep.subr.bf16.mxu1 %v2015_v5  ;;  %v1409_v14 = vrot.slane %v1396_v62, %v1408_v4 }
 0x166   :  { %1173 = vmatpush1.bf16.msra.mxu0 %v1901_v15  ;;  %1764 = vmatpush3.bf16.msra.mxu1 %v1904_v16 }
 0x167   :  { %1174 = vmatprep.subr.bf16.mxu0 %v1907_v17  ;;  %1765 = vmatprep.subr.bf16.mxu1 %v2015_v5 }
 0x16a   :  { %1175 = vmatpush1.bf16.msra.mxu0 %v1905_v18  ;;  %1766 = vmatpush3.bf16.msra.mxu1 %v1908_v19  ;;  %v1404_v18 = vsub.s32 1, %v1399_v56 }
 0x16b   :  { %1176 = vmatprep.subr.bf16.mxu0 %v1911_v20  ;;  %1767 = vmatprep.subr.bf16.mxu1 %v2015_v5 }
 0x16e   :  { %1177 = vmatpush1.bf16.msra.mxu0 %v1909_v21  ;;  %1768 = vmatpush3.bf16.msra.mxu1 %v1912_v22  ;;  %v1405_v22 = vrot.slane %v1396_v62, %v1404_v18 }
 0x16f   :  { %1178 = vmatprep.subr.bf16.mxu0 %v1915_v23  ;;  %1769 = vmatprep.subr.bf16.mxu1 %v2015_v5 }
 0x172   :  { %1179 = vmatpush1.bf16.msra.mxu0 %v1913_v24  ;;  %1770 = vmatpush3.bf16.msra.mxu1 %v1916_v25 }
 0x173   :  { %1180 = vmatprep.subr.bf16.mxu0 %v1919_v26  ;;  %1771 = vmatprep.subr.bf16.mxu1 %v2015_v5 }
 0x176   :  { %1181 = vmatpush1.bf16.msra.mxu0 %v1917_v28  ;;  %1772 = vmatpush3.bf16.msra.mxu1 %v1920_v30 }
 0x177   :  { %1576 = vmatprep.subr.msk.bf16.mxu0 %vm1302_vm1, %v1574_v32  ;;  %1777 = vmatprep.subr.bf16.mxu1 %v2015_v5 }
 0x179   :  { %1199 = vmatmul.mubr.bf16.vlgmr.msra.gmra.mxu0 %v763_v35  ;;  %1774 = vmatmul.mubr.bf16.vlgmr.msra.gmra.mxu1 %v763_v35 }
 0x17a   :  { %1323 = vmatpush1.bf16.msra.mxu0 %v1304_v36  ;;  %1778 = vmatpush3.bf16.msra.mxu1 %v1310_v37  ;;  %v1582_v37 = vld [vmem:[#allocation2] ss:$0 sm:$0xff] }
 0x17b   :  { %1324 = vmatprep.subr.bf16.mxu0 %v1926_v38  ;;  %1779 = vmatprep.subr.bf16.mxu1 %v2015_v5 }
 0x17c   :  { %1344 = vmatprep.mubr.bf16.mxu0 %v2016_v29  ;;  %1783 = vmatprep.mubr.msk.bf16.mxu1 %vm2017_vm0, %v2015_v5  ;;  %v1247_v29 = vld [vmem:[%s2316_s2] sm:$0xf] }
 0x17e   :  { %1325 = vmatpush1.bf16.msra.mxu0 %v1924_v39  ;;  %1780 = vmatpush3.bf16.msra.mxu1 %v1927_v40 }
 0x17f   :  { %1326 = vmatprep.subr.bf16.mxu0 %v1930_v41  ;;  %1781 = vmatprep.subr.bf16.mxu1 %v2015_v5 }
 0x182   :  { %1327 = vmatpush1.bf16.msra.mxu0 %v1928_v42  ;;  %1782 = vmatpush3.bf16.msra.mxu1 %v1931_v43 }
 0x185   :  { %1577 = vmatmul.mubr.msk.bf16.vlgmr.msra.gmra.mxu0 %vm1298_vm2, %v1247_v29  ;;  %1784 = vmatmul.mubr.msk.bf16.vlgmr.msra.gmra.mxu1 %vm1298_vm2, %v1247_v29 }
 0x219   :  { %v991_v44 = vpop.f32.mrf.mxu0  ;;  %v1032_v45 = vpop.f32.mrf.mxu1 }
 0x21b   :  { %v993_v46 = vpop.f32.mrf.mxu0  ;;  %v1755_v47 = vpop.f32.mrf.mxu1 }
 0x21d   :  { %v995_v48 = vpop.f32.mrf.mxu0  ;;  %v1035_v49 = vpop.f32.mrf.mxu1 }
 0x21f   :  { %v996_v50 = vpop.f32.mrf.mxu0  ;;  %v1756_v51 = vpop.f32.mrf.mxu1 }
 0x239   :  { %v1200_v53 = vpop.f32.mrf.mxu0  ;;  %v1241_v5 = vpop.f32.mrf.mxu1 }
 0x23a   :  { %v1201_v63 = vadd.f32 %v1200_v53, %v991_v44  ;;  %v1242_v9 = vadd.f32 %v1241_v5, %v1032_v45 }
 0x23b   :  { %v1202_v54 = vpop.f32.mrf.mxu0  ;;  %v1775_v55 = vpop.f32.mrf.mxu1 }
 0x23c   :  { %v1203_v19 = vadd.f32 %v1202_v54, %v993_v46 }
 0x23d   :  { %v1204_v57 = vpop.f32.mrf.mxu0  ;;  %v1244_v58 = vpop.f32.mrf.mxu1 }
 0x23f   :  { %v1205_v59 = vpop.f32.mrf.mxu0  ;;  %v1776_v60 = vpop.f32.mrf.mxu1 }
 0x245   :  { %v1346_v1 = vpop.f32.mrf.mxu0  ;;  %v1387_v2 = vpop.f32.mrf.mxu1 }
 0x246   :  { %v1393_v3 = vadd.f32 %v1346_v1, %v1201_v63  ;;  %v1395_v13 = vadd.f32 %v1387_v2, %v1242_v9 }
 0x247   :  { %v1348_v6 = vpop.f32.mrf.mxu0  ;;  %v1785_v7 = vpop.f32.mrf.mxu1 }
 0x248   :  { %v1413_v8 = vadd.f32 %v1401_v0, %v1393_v3  ;;  %v1415_v17 = vadd.f32 %v1409_v14, %v1395_v13  ;;  %v1394_v21 = vadd.f32 %v1348_v6, %v1203_v19 }
 0x249   :  { %v1350_v10 = vpop.f32.mrf.mxu0  ;;  %v1390_v11 = vpop.f32.mrf.mxu1 }
 0x24a   :  { %v1579_v12 = vmul.f32 -1.442695, %v1413_v8  ;;  %v1580_v20 = vmul.f32 -1.442695, %v1415_v17  ;;  %v1414_v23 = vadd.f32 %v1405_v22, %v1394_v21 }
 0x24b   :  { %v1351_v15 = vpop.f32.mrf.mxu0  ;;  %v1786_v16 = vpop.f32.mrf.mxu1 }
 0x24c   :  { %1932 = vpow2.f32 %v1579_v12 }
 0x24d   :  { %1934 = vpow2.f32 %v1580_v20 }
 0x24e   :  { %1936 = vtanh.f32 %v1414_v23 }
 0x259   :  { %v1933_v24 = vpop.eup %1932 }
 0x25a   :  { %v1419_v25 = vadd.f32 1.0, %v1933_v24  ;;  %v1935_v26 = vpop.eup %1934 }
 0x25b   :  { %v1426_v27 = vadd.f32 1.0, %v1935_v26  ;;  %v1937_v28 = vpop.eup %1936 }
 0x25c   :  { %1938 = vrcp.f32 %v1419_v25 }
 0x25d   :  { %1940 = vrcp.f32 %v1426_v27 }
 0x269   :  { %v1939_v30 = vpop.eup %1938 }
 0x26a   :  { %v1429_v31 = vmul.f32 %v1939_v30, %v1937_v28  ;;  %v1941_v32 = vpop.eup %1940 }
 0x26c   :  { %1942 = vtanh.f32 %v1429_v31 }
 0x279   :  { %v1943_v33 = vpop.eup %1942 }
 0x27a   :  { %v1431_v35 = vmul.f32 %v1943_v33, %v1941_v32 }
 0x27c   :  { %v1439_v36 = vmul.f32 %v1581_v34, %v1431_v35 }
 0x27e   :  { %1440 = vadd.xlane.f32.xlu0 %v1439_v36 }
 0x307   :  { %v1441_v38 = vpop.xlane.xlu0 %1440 }
 0x308   :  { %v1449_v39 = vadd.f32 %v1582_v37, %v1441_v38 }
 0x30a   :  { %1451 = vst.msk [vmem:[%s2325_s11] sm:$0xff] %vm1450_vm3, %v1449_v39 }
 0x30b   :  { %1456 = vsyncpa [#allocation4], 1 }
 0x30c   :  { %1457 = vsyncpa [#allocation6], 1 }

</bundles_post_ra>
